<compile_context>
chip_gen: v7x
topology: tpu7x:2x2x1
jax: 0.10.0
libtpu: 0.0.40
codegen_flags: <defaults>
</compile_context>

<pallas_src>
import math

import jax
import jax.numpy as jnp
from jax.experimental import pallas as pl
from jax.experimental.pallas import tpu as pltpu


def dqn_kernel(x_ref,
               w1_ref, b1_ref,
               w2_ref, b2_ref,
               w3_ref, b3_ref,
               w4_ref, b4_ref,
               out_ref):
    # fc_1 + relu  (bf16 x bf16 -> f32 accumulate, bias add + relu in f32)
    h = jnp.dot(x_ref[...], w1_ref[...], preferred_element_type=jnp.float32)
    h = jnp.maximum(h + b1_ref[...], 0.0).astype(jnp.bfloat16)
    # fc_2 + relu
    h = jnp.dot(h, w2_ref[...], preferred_element_type=jnp.float32)
    h = jnp.maximum(h + b2_ref[...], 0.0).astype(jnp.bfloat16)
    # fc_3 + relu
    h = jnp.dot(h, w3_ref[...], preferred_element_type=jnp.float32)
    h = jnp.maximum(h + b3_ref[...], 0.0).astype(jnp.bfloat16)
    # fc_4 (q-values, no activation) — keep output in f32
    q = jnp.dot(h, w4_ref[...], preferred_element_type=jnp.float32)
    out_ref[...] = (q + b4_ref[...]).astype(out_ref.dtype)


def dqn_forward(x_nchw, params, *, block_m=256):
    """x_nchw: (B, C, H, W) float32. Returns q_values: (B, n_actions) float32."""
    B = x_nchw.shape[0]
    # Same semantics as torch x.reshape(x.size(0), -1); cast activations to bf16
    # for single-pass MXU matmuls (accumulation stays f32 in-kernel).
    x_flat = x_nchw.reshape(B, -1).astype(jnp.bfloat16)
    in_features = x_flat.shape[1]

    (w1, b1), (w2, b2), (w3, b3), (w4, b4) = params
    w1, w2, w3, w4 = (w.astype(jnp.bfloat16) for w in (w1, w2, w3, w4))
    b1, b2, b3, b4 = (b.astype(jnp.float32) for b in (b1, b2, b3, b4))
    n_actions = w4.shape[1]

    # Batch tiling: single full-batch block when B is small, otherwise tiles of
    # block_m rows (padded up to a multiple of block_m).
    if B <= block_m:
        bm = B
        B_pad = B
    else:
        bm = block_m
        B_pad = int(math.ceil(B / bm)) * bm
    if B_pad != B:
        x_flat = jnp.pad(x_flat, ((0, B_pad - B), (0, 0)))
    num_tiles = B_pad // bm

    # x / out tiles move with the grid; weights & biases are resident
    # (constant index_map -> fetched once, no per-step DMA).
    x_spec = pl.BlockSpec((bm, in_features), lambda i: (i, 0))
    out_spec = pl.BlockSpec((bm, n_actions), lambda i: (i, 0))
    resident = lambda arr: pl.BlockSpec(arr.shape, lambda i: (0, 0))

    # VMEM budget: actual footprint (double-buffered tiles + resident params)
    # plus headroom — a few MiB, not the previous blanket 64 MiB.
    def nbytes(a):
        return a.size * a.dtype.itemsize

    param_bytes = sum(nbytes(a) for a in (w1, b1, w2, b2, w3, b3, w4, b4))
    tile_bytes = bm * in_features * 2 + bm * n_actions * 4
    act_bytes = 3 * bm * w1.shape[1] * 4  # in-kernel intermediate activations
    footprint = 2 * (tile_bytes + param_bytes) + act_bytes
    vmem_limit = max(4 << 20, int(1.5 * footprint))

    out = pl.pallas_call(
        dqn_kernel,
        out_shape=jax.ShapeDtypeStruct((B_pad, n_actions), jnp.float32),
        grid=(num_tiles,),
        in_specs=[
            x_spec,
            resident(w1), resident(b1),
            resident(w2), resident(b2),
            resident(w3), resident(b3),
            resident(w4), resident(b4),
        ],
        out_specs=out_spec,
        compiler_params=pltpu.CompilerParams(
            dimension_semantics=("parallel",),
            vmem_limit_bytes=vmem_limit,
        ),
    )(x_flat, w1, b1, w2, b2, w3, b3, w4, b4)

    return out[:B] if B_pad != B else out


def init_params(key, in_features, hidden, n_actions):
    """Deterministic init mimicking nn.Linear default (uniform +-1/sqrt(fan_in)).

    Weights stored as (fan_in, fan_out) = transpose of torch layout, biases as
    (1, fan_out) for in-kernel broadcasting. Stored in f32; the wrapper casts
    weights to bf16 for the MXU.
    """
    dims = [(in_features, hidden), (hidden, hidden), (hidden, hidden),
            (hidden, n_actions)]
    params = []
    for (fan_in, fan_out) in dims:
        key, kw, kb = jax.random.split(key, 3)
        bound = 1.0 / jnp.sqrt(fan_in)
        w = jax.random.uniform(kw, (fan_in, fan_out), jnp.float32, -bound, bound)
        b = jax.random.uniform(kb, (1, fan_out), jnp.float32, -bound, bound)
        params.append((w, b))
    return params


def dqn_reference(x_nchw, params):
    """Pure-JAX f32 reference of the PyTorch forward for a sanity check."""
    x = x_nchw.reshape(x_nchw.shape[0], -1)
    (w1, b1), (w2, b2), (w3, b3), (w4, b4) = params
    h = jnp.maximum(x @ w1 + b1, 0.0)
    h = jnp.maximum(h @ w2 + b2, 0.0)
    h = jnp.maximum(h @ w3 + b3, 0.0)
    return h @ w4 + b4


if __name__ == "__main__":
    # Small shapes consistent with the module: batch=2, C=4, H=W=16
    # -> in_shape = 4*16*16 = 1024, hidden=128, n_actions=6.
    B, C, H, W = 2, 4, 16, 16
    hidden = 128
    n_actions = 6
    in_features = C * H * W

    key = jax.random.PRNGKey(0)
    key, kx = jax.random.split(key)
    x = jax.random.normal(kx, (B, C, H, W), jnp.float32)

    params = init_params(key, in_features, hidden, n_actions)

    q = dqn_forward(x, params)
    q = jax.block_until_ready(q)

    q_ref = dqn_reference(x, params)
    assert q.shape == (B, n_actions)
    # bf16 weights/activations -> looser tolerance vs the f32 reference.
    assert jnp.allclose(q, q_ref, atol=5e-2, rtol=5e-2), "mismatch vs reference"

    print("KERNEL_OK")
</pallas_src>

<mosaic_0001>
module attributes {stable_mosaic.version = 11 : i64} {
  func.func @dqn_kernel(%arg0: i32, %arg1: memref<2x1024xbf16, #tpu.memory_space<vmem>>, %arg2: memref<1024x128xbf16, #tpu.memory_space<vmem>>, %arg3: memref<1x128xf32, #tpu.memory_space<vmem>>, %arg4: memref<128x128xbf16, #tpu.memory_space<vmem>>, %arg5: memref<1x128xf32, #tpu.memory_space<vmem>>, %arg6: memref<128x128xbf16, #tpu.memory_space<vmem>>, %arg7: memref<1x128xf32, #tpu.memory_space<vmem>>, %arg8: memref<128x6xbf16, #tpu.memory_space<vmem>>, %arg9: memref<1x6xf32, #tpu.memory_space<vmem>>, %arg10: memref<2x6xf32, #tpu.memory_space<vmem>>) attributes {dimension_semantics = [#tpu.dimension_semantics<parallel>], iteration_bounds = array<i64: 1>, scalar_prefetch = 0 : i64, scratch_operands = 0 : i64, tpu.core_type = #tpu.core_type<tc>, window_params = [{transform_indices = @transform_0, window_bounds = array<i64: 2, 1024>}, {pipeline_mode = #tpu.pipeline_mode<synchronous>, transform_indices = @transform_1, window_bounds = array<i64: 1024, 128>}, {pipeline_mode = #tpu.pipeline_mode<synchronous>, transform_indices = @transform_2, window_bounds = array<i64: 1, 128>}, {pipeline_mode = #tpu.pipeline_mode<synchronous>, transform_indices = @transform_3, window_bounds = array<i64: 128, 128>}, {pipeline_mode = #tpu.pipeline_mode<synchronous>, transform_indices = @transform_4, window_bounds = array<i64: 1, 128>}, {pipeline_mode = #tpu.pipeline_mode<synchronous>, transform_indices = @transform_5, window_bounds = array<i64: 128, 128>}, {pipeline_mode = #tpu.pipeline_mode<synchronous>, transform_indices = @transform_6, window_bounds = array<i64: 1, 128>}, {pipeline_mode = #tpu.pipeline_mode<synchronous>, transform_indices = @transform_7, window_bounds = array<i64: 128, 6>}, {pipeline_mode = #tpu.pipeline_mode<synchronous>, transform_indices = @transform_8, window_bounds = array<i64: 1, 6>}, {transform_indices = @transform_9, window_bounds = array<i64: 2, 6>}]} {
    %c0 = arith.constant 0 : index
    %c0_0 = arith.constant 0 : index
    %0 = vector.load %arg1[%c0, %c0_0] : memref<2x1024xbf16, #tpu.memory_space<vmem>>, vector<2x1024xbf16>
    %c0_1 = arith.constant 0 : index
    %c0_2 = arith.constant 0 : index
    %1 = vector.load %arg2[%c0_1, %c0_2] : memref<1024x128xbf16, #tpu.memory_space<vmem>>, vector<1024x128xbf16>
    %cst = arith.constant dense<0.000000e+00> : vector<2x128xf32>
    %2 = tpu.matmul %0, %1, %cst {dimension_numbers = #tpu.dot_dimension_numbers<[1], [0], [0], [1], [0, 0, 1, 1], [], []>} : vector<2x1024xbf16>, vector<1024x128xbf16>, vector<2x128xf32> -> vector<2x128xf32>
    %c0_3 = arith.constant 0 : index
    %c0_4 = arith.constant 0 : index
    %3 = vector.load %arg3[%c0_3, %c0_4] : memref<1x128xf32, #tpu.memory_space<vmem>>, vector<1x128xf32>
    %4 = vector.broadcast %3 : vector<1x128xf32> to vector<2x128xf32>
    %5 = arith.addf %2, %4 : vector<2x128xf32>
    %cst_5 = arith.constant 0.000000e+00 : f32
    %6 = vector.broadcast %cst_5 : f32 to vector<2x128xf32>
    %7 = arith.maximumf %5, %6 : vector<2x128xf32>
    %8 = arith.truncf %7 : vector<2x128xf32> to vector<2x128xbf16>
    %c0_6 = arith.constant 0 : index
    %c0_7 = arith.constant 0 : index
    %9 = vector.load %arg4[%c0_6, %c0_7] : memref<128x128xbf16, #tpu.memory_space<vmem>>, vector<128x128xbf16>
    %cst_8 = arith.constant dense<0.000000e+00> : vector<2x128xf32>
    %10 = tpu.matmul %8, %9, %cst_8 {dimension_numbers = #tpu.dot_dimension_numbers<[1], [0], [0], [1], [0, 0, 1, 1], [], []>} : vector<2x128xbf16>, vector<128x128xbf16>, vector<2x128xf32> -> vector<2x128xf32>
    %c0_9 = arith.constant 0 : index
    %c0_10 = arith.constant 0 : index
    %11 = vector.load %arg5[%c0_9, %c0_10] : memref<1x128xf32, #tpu.memory_space<vmem>>, vector<1x128xf32>
    %12 = vector.broadcast %11 : vector<1x128xf32> to vector<2x128xf32>
    %13 = arith.addf %10, %12 : vector<2x128xf32>
    %cst_11 = arith.constant 0.000000e+00 : f32
    %14 = vector.broadcast %cst_11 : f32 to vector<2x128xf32>
    %15 = arith.maximumf %13, %14 : vector<2x128xf32>
    %16 = arith.truncf %15 : vector<2x128xf32> to vector<2x128xbf16>
    %c0_12 = arith.constant 0 : index
    %c0_13 = arith.constant 0 : index
    %17 = vector.load %arg6[%c0_12, %c0_13] : memref<128x128xbf16, #tpu.memory_space<vmem>>, vector<128x128xbf16>
    %cst_14 = arith.constant dense<0.000000e+00> : vector<2x128xf32>
    %18 = tpu.matmul %16, %17, %cst_14 {dimension_numbers = #tpu.dot_dimension_numbers<[1], [0], [0], [1], [0, 0, 1, 1], [], []>} : vector<2x128xbf16>, vector<128x128xbf16>, vector<2x128xf32> -> vector<2x128xf32>
    %c0_15 = arith.constant 0 : index
    %c0_16 = arith.constant 0 : index
    %19 = vector.load %arg7[%c0_15, %c0_16] : memref<1x128xf32, #tpu.memory_space<vmem>>, vector<1x128xf32>
    %20 = vector.broadcast %19 : vector<1x128xf32> to vector<2x128xf32>
    %21 = arith.addf %18, %20 : vector<2x128xf32>
    %cst_17 = arith.constant 0.000000e+00 : f32
    %22 = vector.broadcast %cst_17 : f32 to vector<2x128xf32>
    %23 = arith.maximumf %21, %22 : vector<2x128xf32>
    %24 = arith.truncf %23 : vector<2x128xf32> to vector<2x128xbf16>
    %c0_18 = arith.constant 0 : index
    %c0_19 = arith.constant 0 : index
    %25 = vector.load %arg8[%c0_18, %c0_19] : memref<128x6xbf16, #tpu.memory_space<vmem>>, vector<128x6xbf16>
    %cst_20 = arith.constant dense<0.000000e+00> : vector<2x6xf32>
    %26 = tpu.matmul %24, %25, %cst_20 {dimension_numbers = #tpu.dot_dimension_numbers<[1], [0], [0], [1], [0, 0, 1, 1], [], []>} : vector<2x128xbf16>, vector<128x6xbf16>, vector<2x6xf32> -> vector<2x6xf32>
    %c0_21 = arith.constant 0 : index
    %c0_22 = arith.constant 0 : index
    %27 = vector.load %arg9[%c0_21, %c0_22] : memref<1x6xf32, #tpu.memory_space<vmem>>, vector<1x6xf32>
    %28 = vector.broadcast %27 : vector<1x6xf32> to vector<2x6xf32>
    %29 = arith.addf %26, %28 : vector<2x6xf32>
    %c0_23 = arith.constant 0 : index
    %c0_24 = arith.constant 0 : index
    %30 = vector.load %arg10[%c0_23, %c0_24] : memref<2x6xf32, #tpu.memory_space<vmem>>, vector<2x6xf32>
    tpu.vector_store %arg10[%c0_23, %c0_24], %29 {strides = array<i32>} : memref<2x6xf32, #tpu.memory_space<vmem>>, vector<2x6xf32>,
    return
  }
  func.func @transform_0(%arg0: i32) -> (i32, i32) {
    %c0_i32 = arith.constant 0 : i32
    %c0_i32_0 = arith.constant 0 : i32
    return %arg0, %c0_i32 : i32, i32
  }
  func.func @transform_1(%arg0: i32) -> (i32, i32) {
    %c0_i32 = arith.constant 0 : i32
    %c0_i32_0 = arith.constant 0 : i32
    %c0_i32_1 = arith.constant 0 : i32
    return %c0_i32, %c0_i32_0 : i32, i32
  }
  func.func @transform_2(%arg0: i32) -> (i32, i32) {
    %c0_i32 = arith.constant 0 : i32
    %c0_i32_0 = arith.constant 0 : i32
    %c0_i32_1 = arith.constant 0 : i32
    return %c0_i32, %c0_i32_0 : i32, i32
  }
  func.func @transform_3(%arg0: i32) -> (i32, i32) {
    %c0_i32 = arith.constant 0 : i32
    %c0_i32_0 = arith.constant 0 : i32
    %c0_i32_1 = arith.constant 0 : i32
    return %c0_i32, %c0_i32_0 : i32, i32
  }
  func.func @transform_4(%arg0: i32) -> (i32, i32) {
    %c0_i32 = arith.constant 0 : i32
    %c0_i32_0 = arith.constant 0 : i32
    %c0_i32_1 = arith.constant 0 : i32
    return %c0_i32, %c0_i32_0 : i32, i32
  }
  func.func @transform_5(%arg0: i32) -> (i32, i32) {
    %c0_i32 = arith.constant 0 : i32
    %c0_i32_0 = arith.constant 0 : i32
    %c0_i32_1 = arith.constant 0 : i32
    return %c0_i32, %c0_i32_0 : i32, i32
  }
  func.func @transform_6(%arg0: i32) -> (i32, i32) {
    %c0_i32 = arith.constant 0 : i32
    %c0_i32_0 = arith.constant 0 : i32
    %c0_i32_1 = arith.constant 0 : i32
    return %c0_i32, %c0_i32_0 : i32, i32
  }
  func.func @transform_7(%arg0: i32) -> (i32, i32) {
    %c0_i32 = arith.constant 0 : i32
    %c0_i32_0 = arith.constant 0 : i32
    %c0_i32_1 = arith.constant 0 : i32
    return %c0_i32, %c0_i32_0 : i32, i32
  }
  func.func @transform_8(%arg0: i32) -> (i32, i32) {
    %c0_i32 = arith.constant 0 : i32
    %c0_i32_0 = arith.constant 0 : i32
    %c0_i32_1 = arith.constant 0 : i32
    return %c0_i32, %c0_i32_0 : i32, i32
  }
  func.func @transform_9(%arg0: i32) -> (i32, i32) {
    %c0_i32 = arith.constant 0 : i32
    %c0_i32_0 = arith.constant 0 : i32
    return %arg0, %c0_i32 : i32, i32
  }
}

</mosaic_0001>

<bundles_post_ra>
// kernel: tpu_custom_call.1
= control target key start
LH: loop header
LB: loop body
LE: loop exit
PB: predicated region body
PF: predicated region fallthrough
CT: control target
= control target key end

     0   :  { %14 = vsyncpa [#allocation3], 0  ;;  %s1793_s0 = inlined_call_operand.vmem [shape: bf16[2,1024], index: 0, kind: input, shape index: {}]   ;;  %s1794_s1 = inlined_call_operand.hbm [shape: bf16[1024,128], index: 1, kind: input, shape index: {}]   ;;  %s1795_s2 = inlined_call_operand.vmem [shape: f32[1,128], index: 2, kind: input, shape index: {}]   ;;  %s1796_s3 = inlined_call_operand.vmem [shape: bf16[128,128], index: 3, kind: input, shape index: {}]   ;;  %s1797_s4 = inlined_call_operand.vmem [shape: f32[1,128], index: 4, kind: input, shape index: {}]   ;;  %s1798_s5 = inlined_call_operand.hbm [shape: bf16[128,128], index: 5, kind: input, shape index: {}]   ;;  %s1799_s6 = inlined_call_operand.vmem [shape: f32[1,128], index: 6, kind: input, shape index: {}]   ;;  %s1800_s7 = inlined_call_operand.vmem [shape: bf16[128,6], index: 7, kind: input, shape index: {}]   ;;  %s1801_s8 = inlined_call_operand.vmem [shape: f32[1,6], index: 8, kind: input, shape index: {}]   ;;  %s1802_s9 = inlined_call_operand.hbm [shape: f32[2,6], index: 9, kind: output, shape index: {}]  }
   0x1   :  { %15 = vsyncpa [#allocation6], 0 }
   0x2   :  { %16 = vsyncpa [#allocation4], 0  ;;  %s1593_s30 = smov [#allocation2]   ;;  %s1521_s13 = scalar_lea.hbm %s1794_s1, 8192 }
   0x3   :  { %s24_s10 = sshll.u32 %s1593_s30, 4  ;;  %p1522_p0 = scmp.ne.s32.totalorder %s1794_s1, %s1521_s13  ;;  %s25_s10 = int_to_ptr.vmem [resolvable:$true] %s24_s10 }
   0x4   :  { %p1525_p1 = scmp.lt.u32.totalorder %s1521_s13, %s1794_s1 }
   0x6   :  { %p1527_p2 = pnand %p1525_p1, %p1522_p0 }
   0x8   :  { %1530 = shalt.err (!%p1527_p2)
}
   0x9   :  { %s1531_s18 = scalar_lea.vmem %s25_s10, 8192  ;;  %p1536_p4 = scmp.lt.s32.totalorder %s25_s10, %s25_s10 }
   0xa   :  { %p1532_p3 = scmp.ne.s32.totalorder %s25_s10, %s1531_s18  ;;  %p1537_p5 = scmp.lt.s32.totalorder %s1531_s18, %s1531_s18 }
   0xc   :  { %p1538_p6 = por %p1537_p5, %p1536_p4 }
   0xe   :  { %p1539_p7 = pnand %p1538_p6, %p1532_p3 }
  0x10   :  { %1542 = shalt.err (!%p1539_p7)
}
  0x11   :  { %s1594_s19 = smov 64   ;;  %s1595_s20 = smov 4  }
  0x12   :  { %30 = dma.hbm_to_vmem [thread:$0]  %s1794_s1, 8192, %s25_s10, [#allocation3], %s1594_s19, %s1594_s19, %s1595_s20  }
  0x13   :  { %s1596_s23 = smov [#allocation5]   ;;  %s1543_s27 = scalar_lea.hbm %s1798_s5, 1024 }
  0x14   :  { %s42_s24 = sshll.u32 %s1596_s23, 4  ;;  %p1544_p8 = scmp.ne.s32.totalorder %s1798_s5, %s1543_s27  ;;  %s43_s24 = int_to_ptr.vmem [resolvable:$true] %s42_s24 }
  0x15   :  { %p1547_p9 = scmp.lt.u32.totalorder %s1543_s27, %s1798_s5 }
  0x17   :  { %p1549_p10 = pnand %p1547_p9, %p1544_p8 }
  0x19   :  { %1552 = shalt.err (!%p1549_p10)
}
  0x1a   :  { %s1553_s12 = scalar_lea.vmem %s43_s24, 1024  ;;  %p1558_p12 = scmp.lt.s32.totalorder %s43_s24, %s43_s24 }
  0x1b   :  { %p1554_p11 = scmp.ne.s32.totalorder %s43_s24, %s1553_s12  ;;  %p1559_p13 = scmp.lt.s32.totalorder %s1553_s12, %s1553_s12 }
  0x1d   :  { %p1560_p0 = por %p1559_p13, %p1558_p12 }
  0x1f   :  { %p1561_p1 = pnand %p1560_p0, %p1554_p11 }
  0x21   :  { %1564 = shalt.err (!%p1561_p1)
}
  0x22   :  { %48 = dma.hbm_to_vmem [thread:$0]  %s1798_s5, 1024, %s43_s24, [#allocation6], %s1594_s19, %s1594_s19, %s1595_s20  }
  0x23   :  { %1587 = dma.done.wait [#allocation3], 8192  }
  0x24   :  { %1588 = vsyncadd [#allocation3], 4294959104 }
  0x25   :  { %1589 = dma.done.wait [#allocation6], 1024  }
  0x26   :  { %1590 = vsyncadd [#allocation6], 4294966272  ;;  %v1432_v0 = vld [vmem:[#allocation2 + $0x40] sm:$0xff]   ;;  %v1436_v4 = vld [vmem:[#allocation2 + $0x48] sm:$0xff]   ;;  %v1597_v22 = vmov 1966171168   ;;  %v203_v24 = vlaneseq }
  0x27   :  { %v1433_v1 = vld [vmem:[#allocation2 + $0xc0] sm:$0xff]   ;;  %1249 = vmatprep.subr.bf16.mxu0 %v1432_v0  ;;  %v1437_v5 = vld [vmem:[#allocation2 + $0xc8] sm:$0xff]   ;;  %v1440_v8 = vld [vmem:[#allocation2 + $0x50] sm:$0xff]   ;;  %v201_v23 = vunpack.c.l.s4 %v1597_v22  ;;  %vm1599_vm0 = vmmov 0   ;;  %s1600_s26 = smov [#allocation7]   ;;  %vm1139_vm1 = vcmask 41984  }
  0x28   :  { %v1434_v2 = vld [vmem:[#allocation2] sm:$0xff]   ;;  %1271 = vmatprep.subr.bf16.mxu1 %v1433_v1  ;;  %v1438_v6 = vld [vmem:[#allocation2 + $0x8] sm:$0xff]   ;;  %v1441_v9 = vld [vmem:[#allocation2 + $0xd0] sm:$0xff]   ;;  %v204_v30 = vshrl.u32 %v203_v24, 7  ;;  %s1147_s27 = sshll.u32 %s1600_s26, 4  ;;  %s1148_s27 = int_to_ptr.vmem [resolvable:$true] %s1147_s27 }
  0x29   :  { %v1435_v3 = vld [vmem:[#allocation2 + $0x80] sm:$0xff]   ;;  %1250 = vmatpush3.bf16.msra.mxu0 %v1434_v2  ;;  %v1439_v7 = vld [vmem:[#allocation2 + $0x88] sm:$0xff]   ;;  %v1442_v10 = vld [vmem:[#allocation2 + $0x10] sm:$0xff]   ;;  %v202_v29 = vunpack.c.0.s8 %v201_v23  ;;  %p1570_p3 = scmp.lt.s32.totalorder %s1148_s27, %s1148_s27 }
  0x2a   :  { %1272 = vmatpush3.bf16.msra.mxu1 %v1435_v3  ;;  %1251 = vmatprep.subr.bf16.mxu0 %v1436_v4  ;;  %v1443_v11 = vld [vmem:[#allocation2 + $0x90] sm:$0xff]   ;;  %v1444_v12 = vld [vmem:[#allocation2 + $0x58] sm:$0xff]   ;;  %v1448_v16 = vld [vmem:[#allocation2 + $0x60] sm:$0xff]  }
  0x2b   :  { %1273 = vmatprep.subr.bf16.mxu1 %v1437_v5  ;;  %v1445_v13 = vld [vmem:[#allocation2 + $0xd8] sm:$0xff]   ;;  %v1449_v17 = vld [vmem:[#allocation2 + $0xe0] sm:$0xff]   ;;  %v1452_v20 = vld [vmem:[#allocation2 + $0x68] sm:$0xff]   ;;  %v1675_v35 = vsub.s32 %v202_v29, %v204_v30 }
  0x2c   :  { %v1446_v14 = vld [vmem:[#allocation2 + $0x18] sm:$0xff]   ;;  %v1450_v18 = vld [vmem:[#allocation2 + $0x20] sm:$0xff]   ;;  %v1453_v21 = vld [vmem:[#allocation2 + $0xe8] sm:$0xff]  }
  0x2d   :  { %1252 = vmatpush3.bf16.msra.mxu0 %v1438_v6  ;;  %v1447_v15 = vld [vmem:[#allocation2 + $0x98] sm:$0xff]   ;;  %v1451_v19 = vld [vmem:[#allocation2 + $0xa0] sm:$0xff]   ;;  %v1454_v25 = vld [vmem:[#allocation2 + $0x28] sm:$0xff]  }
  0x2e   :  { %1274 = vmatpush3.bf16.msra.mxu1 %v1439_v7  ;;  %1253 = vmatprep.subr.bf16.mxu0 %v1440_v8  ;;  %v1455_v26 = vld [vmem:[#allocation2 + $0xa8] sm:$0xff]   ;;  %v1456_v27 = vld [vmem:[#allocation2 + $0x70] sm:$0xff]   ;;  %v1460_v33 = vld [vmem:[#allocation2 + $0x78] sm:$0xff]  }
  0x2f   :  { %1275 = vmatprep.subr.bf16.mxu1 %v1441_v9  ;;  %v1457_v28 = vld [vmem:[#allocation2 + $0xf0] sm:$0xff]   ;;  %v1461_v34 = vld [vmem:[#allocation2 + $0xf8] sm:$0xff]   ;;  %v62_v38 = vld [vmem:[%s1793_s0] sm:$0xff] }
  0x30   :  { %v1458_v31 = vld [vmem:[#allocation2 + $0x30] sm:$0xff]   ;;  %v1462_v36 = vld [vmem:[#allocation2 + $0x38] sm:$0xff]   ;;  %v199_v39 = vcombine.high %v62_v38, %v62_v38  ;;  %v206_v40 = vrot.slane %v62_v38, %v1675_v35  ;;  %v1465_v41 = vld [vmem:[#allocation2 + $0x140] sm:$0xff]  }
  0x31   :  { %1254 = vmatpush3.bf16.msra.mxu0 %v1442_v10  ;;  %v1459_v32 = vld [vmem:[#allocation2 + $0xb0] sm:$0xff]   ;;  %v1463_v37 = vld [vmem:[#allocation2 + $0xb8] sm:$0xff]   ;;  %v1466_v42 = vld [vmem:[#allocation2 + $0x1c0] sm:$0xff]  }
  0x32   :  { %1276 = vmatpush3.bf16.msra.mxu1 %v1443_v11  ;;  %1255 = vmatprep.subr.bf16.mxu0 %v1444_v12  ;;  %v214_v43 = vcombine.high %v206_v40, %v206_v40  ;;  %v222_v44 = vrot.slane %v206_v40, %v1675_v35  ;;  %v1683_v45 = vrot.slane %v199_v39, %v1675_v35  ;;  %v1467_v46 = vld [vmem:[#allocation2 + $0x100] sm:$0xff]   ;;  %v1469_v51 = vld [vmem:[#allocation2 + $0x148] sm:$0xff]   ;;  %v1473_v58 = vld [vmem:[#allocation2 + $0x150] sm:$0xff]  }
  0x33   :  { %1277 = vmatprep.subr.bf16.mxu1 %v1445_v13  ;;  %v1468_v48 = vld [vmem:[#allocation2 + $0x180] sm:$0xff]   ;;  %v1470_v53 = vld [vmem:[#allocation2 + $0x1c8] sm:$0xff]   ;;  %v1474_v59 = vld [vmem:[#allocation2 + $0x1d0] sm:$0xff]  }
  0x34   :  { %v236_v47 = vrot.slane %v214_v43, %v1675_v35  ;;  %v215_v49 = vcombine.high %v1683_v45, %v1683_v45  ;;  %v244_v50 = vcombine.high %v222_v44, %v222_v44  ;;  %v1471_v55 = vld [vmem:[#allocation2 + $0x108] sm:$0xff]   ;;  %v1475_v60 = vld [vmem:[#allocation2 + $0x110] sm:$0xff]   ;;  %v1477_v62 = vld [vmem:[#allocation2 + $0x158] sm:$0xff]  }
  0x35   :  { %1256 = vmatpush3.bf16.msra.mxu0 %v1446_v14  ;;  %v1472_v56 = vld [vmem:[#allocation2 + $0x188] sm:$0xff]   ;;  %v1476_v61 = vld [vmem:[#allocation2 + $0x190] sm:$0xff]   ;;  %v1478_v63 = vld [vmem:[#allocation2 + $0x1d8] sm:$0xff]  }
  0x36   :  { %1278 = vmatpush3.bf16.msra.mxu1 %v1447_v15  ;;  %1257 = vmatprep.subr.bf16.mxu0 %v1448_v16  ;;  %v246_v52 = vcombine.high %v236_v47, %v236_v47  ;;  %v243_v54 = vrot.slane %v215_v49, %v1675_v35  ;;  %v1479_v0 = vld [vmem:[#allocation2 + $0x118] sm:$0xff]   ;;  %v1481_v2 = vld [vmem:[#allocation2 + $0x160] sm:$0xff]   ;;  %v1485_v6 = vld [vmem:[#allocation2 + $0x168] sm:$0xff]  }
  0x37   :  { %1279 = vmatprep.subr.bf16.mxu1 %v1449_v17  ;;  %672 = vmatprep.mubr.bf16.mxu0 %v236_v47  ;;  %v1480_v1 = vld [vmem:[#allocation2 + $0x198] sm:$0xff]   ;;  %v1482_v3 = vld [vmem:[#allocation2 + $0x1e0] sm:$0xff]   ;;  %v1486_v7 = vld [vmem:[#allocation2 + $0x1e8] sm:$0xff]  }
  0x38   :  { %712 = vmatprep.mubr.bf16.mxu1 %v246_v52  ;;  %v247_v57 = vcombine.high %v243_v54, %v243_v54  ;;  %v1483_v4 = vld [vmem:[#allocation2 + $0x120] sm:$0xff]   ;;  %v1487_v8 = vld [vmem:[#allocation2 + $0x128] sm:$0xff]   ;;  %v1489_v10 = vld [vmem:[#allocation2 + $0x170] sm:$0xff]  }
  0x39   :  { %1258 = vmatpush3.bf16.msra.mxu0 %v1450_v18  ;;  %v1484_v5 = vld [vmem:[#allocation2 + $0x1a0] sm:$0xff]   ;;  %v1488_v9 = vld [vmem:[#allocation2 + $0x1a8] sm:$0xff]   ;;  %v1490_v11 = vld [vmem:[#allocation2 + $0x1f0] sm:$0xff]   ;;  %v229_v18 = vrot.slane %v1683_v45, %v1675_v35 }
  0x3a   :  { %1280 = vmatpush3.bf16.msra.mxu1 %v1451_v19  ;;  %1259 = vmatprep.subr.bf16.mxu0 %v1452_v20  ;;  %v1491_v12 = vld [vmem:[#allocation2 + $0x130] sm:$0xff]   ;;  %v1493_v14 = vld [vmem:[#allocation2 + $0x178] sm:$0xff]   ;;  %v1497_v20 = vld [vmem:[%s1796_s3] sm:$0xff]  }
  0x3b   :  { %1281 = vmatprep.subr.bf16.mxu1 %v1453_v21  ;;  %v1492_v13 = vld [vmem:[#allocation2 + $0x1b0] sm:$0xff]   ;;  %v1494_v15 = vld [vmem:[#allocation2 + $0x1f8] sm:$0xff]   ;;  %v245_v19 = vcombine.high %v229_v18, %v229_v18  ;;  %v1598_v21 = vmov 0.0   ;;  %v1498_v22 = vld [vmem:[%s1796_s3 + $0x8] sm:$0xff]  }
  0x3c   :  { %v1495_v16 = vld [vmem:[#allocation2 + $0x138] sm:$0xff]   ;;  %v1499_v23 = vld [vmem:[%s1796_s3 + $0x10] sm:$0xff]   ;;  %v1505_v29 = vld [vmem:[#allocation5] sm:$0xff]  }
  0x3d   :  { %1260 = vmatpush3.bf16.msra.mxu0 %v1454_v25  ;;  %v1496_v17 = vld [vmem:[#allocation2 + $0x1b8] sm:$0xff]   ;;  %v1501_v25 = vld [vmem:[%s1796_s3 + $0x20] sm:$0xff]   ;;  %v1506_v30 = vld [vmem:[#allocation5 + $0x8] sm:$0xff]  }
  0x3e   :  { %1282 = vmatpush3.bf16.msra.mxu1 %v1455_v26  ;;  %1261 = vmatprep.subr.bf16.mxu0 %v1456_v27  ;;  %v1500_v24 = vld [vmem:[%s1796_s3 + $0x18] sm:$0xff]   ;;  %v1502_v26 = vld [vmem:[%s1796_s3 + $0x28] sm:$0xff]   ;;  %v1503_v27 = vld [vmem:[%s1796_s3 + $0x30] sm:$0xff]  }
  0x3f   :  { %1283 = vmatprep.subr.bf16.mxu1 %v1457_v28  ;;  %v1504_v28 = vld [vmem:[%s1796_s3 + $0x38] sm:$0xff]  }
  0x41   :  { %1262 = vmatpush3.bf16.msra.mxu0 %v1458_v31  ;;  %v1507_v31 = vld [vmem:[#allocation5 + $0x10] sm:$0xff]  }
  0x42   :  { %1284 = vmatpush3.bf16.msra.mxu1 %v1459_v32  ;;  %1263 = vmatprep.subr.bf16.mxu0 %v1460_v33  ;;  %v1508_v32 = vld [vmem:[#allocation5 + $0x18] sm:$0xff]   ;;  %v1509_v33 = vld [vmem:[#allocation5 + $0x20] sm:$0xff]  }
  0x43   :  { %1285 = vmatprep.subr.bf16.mxu1 %v1461_v34  ;;  %v1510_v34 = vld [vmem:[#allocation5 + $0x28] sm:$0xff]  }
  0x45   :  { %1264 = vmatpush3.bf16.msra.mxu0 %v1462_v36  ;;  %v1157_v36 = vld [vmem:[%s1795_s2] ss:$0 sm:$0xff] }
  0x46   :  { %1286 = vmatpush3.bf16.msra.mxu1 %v1463_v37  ;;  %1293 = vmatprep.subr.bf16.mxu0 %v1465_v41 }
  0x47   :  { %1315 = vmatprep.subr.bf16.mxu1 %v1466_v42 }
  0x48   :  { %673 = vmatmul.mubr.bf16.vlgmr.msra.gmra.mrb[0].mxu0 %v222_v44 }
  0x49   :  { %1294 = vmatpush3.bf16.msra.mxu0 %v1467_v46  ;;  %713 = vmatmul.mubr.bf16.vlgmr.msra.gmra.mrb[0].mxu1 %v244_v50 }
  0x4a   :  { %1295 = vmatprep.subr.bf16.mxu0 %v1469_v51  ;;  %1316 = vmatpush3.bf16.msra.mxu1 %v1468_v48 }
  0x4b   :  { %752 = vmatprep.mubr.bf16.mxu0 %v243_v54  ;;  %1317 = vmatprep.subr.bf16.mxu1 %v1470_v53 }
  0x4c   :  { %792 = vmatprep.mubr.bf16.mxu1 %v247_v57 }
  0x4d   :  { %1296 = vmatpush3.bf16.msra.mxu0 %v1471_v55 }
  0x4e   :  { %1297 = vmatprep.subr.bf16.mxu0 %v1473_v58  ;;  %1318 = vmatpush3.bf16.msra.mxu1 %v1472_v56 }
  0x4f   :  { %1319 = vmatprep.subr.bf16.mxu1 %v1474_v59 }
  0x51   :  { %1298 = vmatpush3.bf16.msra.mxu0 %v1475_v60 }
  0x52   :  { %1299 = vmatprep.subr.bf16.mxu0 %v1477_v62  ;;  %1320 = vmatpush3.bf16.msra.mxu1 %v1476_v61  ;;  %v1511_v62 = vld [vmem:[#allocation5 + $0x30] sm:$0xff]  }
  0x53   :  { %1321 = vmatprep.subr.bf16.mxu1 %v1478_v63  ;;  %v1512_v63 = vld [vmem:[#allocation5 + $0x38] sm:$0xff]  }
  0x55   :  { %1300 = vmatpush3.bf16.msra.mxu0 %v1479_v0  ;;  %v1513_v0 = vld [vmem:[%s1800_s7] sm:$0xff]  }
  0x56   :  { %1301 = vmatprep.subr.bf16.mxu0 %v1481_v2  ;;  %1322 = vmatpush3.bf16.msra.mxu1 %v1480_v1  ;;  %v1514_v1 = vld [vmem:[%s1800_s7 + $0x8] sm:$0xff]   ;;  %v1515_v2 = vld [vmem:[%s1800_s7 + $0x10] sm:$0xff]  }
  0x57   :  { %1323 = vmatprep.subr.bf16.mxu1 %v1482_v3  ;;  %v1516_v3 = vld [vmem:[%s1800_s7 + $0x18] sm:$0xff]  }
  0x59   :  { %1302 = vmatpush3.bf16.msra.mxu0 %v1483_v4  ;;  %v1517_v4 = vld [vmem:[%s1800_s7 + $0x20] sm:$0xff]  }
  0x5a   :  { %1303 = vmatprep.subr.bf16.mxu0 %v1485_v6  ;;  %1324 = vmatpush3.bf16.msra.mxu1 %v1484_v5  ;;  %v1518_v5 = vld [vmem:[%s1800_s7 + $0x28] sm:$0xff]   ;;  %v1222_v6 = vld [vmem:[%s1797_s4] ss:$0 sm:$0xff] }
  0x5b   :  { %1325 = vmatprep.subr.bf16.mxu1 %v1486_v7 }
  0x5d   :  { %1304 = vmatpush3.bf16.msra.mxu0 %v1487_v8 }
  0x5e   :  { %1305 = vmatprep.subr.bf16.mxu0 %v1489_v10  ;;  %1326 = vmatpush3.bf16.msra.mxu1 %v1488_v9 }
  0x5f   :  { %1327 = vmatprep.subr.bf16.mxu1 %v1490_v11 }
  0x61   :  { %1306 = vmatpush3.bf16.msra.mxu0 %v1491_v12 }
  0x62   :  { %1307 = vmatprep.subr.bf16.mxu0 %v1493_v14  ;;  %1328 = vmatpush3.bf16.msra.mxu1 %v1492_v13  ;;  %v1519_v14 = vld [vmem:[%s1800_s7 + $0x30] sm:$0xff]  }
  0x63   :  { %1329 = vmatprep.subr.bf16.mxu1 %v1494_v15  ;;  %v1520_v15 = vld [vmem:[%s1800_s7 + $0x38] sm:$0xff]  }
  0x65   :  { %1308 = vmatpush3.bf16.msra.mxu0 %v1495_v16  ;;  %v1231_v16 = vld [vmem:[%s1799_s6] ss:$0 sm:$0xff]  ;;  %s1565_s6 = scalar_lea.vmem %s1148_s27, 32 }
  0x66   :  { %1330 = vmatpush3.bf16.msra.mxu1 %v1496_v17  ;;  %1364 = vmatprep.subr.bf16.mxu0 %v1598_v21  ;;  %p1566_p2 = scmp.ne.s32.totalorder %s1148_s27, %s1565_s6  ;;  %p1571_p4 = scmp.lt.s32.totalorder %s1565_s6, %s1565_s6 }
  0x67   :  { %1384 = vmatprep.subr.bf16.mxu1 %v1598_v21 }
  0x68   :  { %753 = vmatmul.mubr.bf16.vlgmr.msra.gmra.mrb[4].mxu0 %v229_v18  ;;  %p1572_p5 = por %p1571_p4, %p1570_p3 }
  0x69   :  { %793 = vmatmul.mubr.bf16.vlgmr.msra.gmra.mrb[4].mxu1 %v245_v19  ;;  %1365 = vmatpush3.bf16.msra.mxu0 %v1497_v20 }
  0x6a   :  { %1366 = vmatprep.subr.bf16.mxu0 %v1598_v21  ;;  %1380 = vmatprep.mubr.msk.bf16.mxu0 %vm1599_vm0, %v1598_v21  ;;  %p1573_p6 = pnand %p1572_p5, %p1566_p2 }
  0x6b   :  { %1400 = vmatprep.mubr.msk.bf16.mxu1 %vm1599_vm0, %v1598_v21  ;;  %1385 = vmatpush3.bf16.msra.mxu1 %v1505_v29 }
  0x6c   :  { %1386 = vmatprep.subr.bf16.mxu1 %v1598_v21 }
  0x6d   :  { %1367 = vmatpush3.bf16.msra.mxu0 %v1498_v22 }
  0x6e   :  { %1368 = vmatprep.subr.bf16.mxu0 %v1598_v21 }
  0x6f   :  { %1387 = vmatpush3.bf16.msra.mxu1 %v1506_v30 }
  0x70   :  { %1388 = vmatprep.subr.bf16.mxu1 %v1598_v21 }
  0x71   :  { %1369 = vmatpush3.bf16.msra.mxu0 %v1499_v23 }
  0x72   :  { %1370 = vmatprep.subr.bf16.mxu0 %v1598_v21 }
  0x73   :  { %1389 = vmatpush3.bf16.msra.mxu1 %v1507_v31 }
  0x74   :  { %1390 = vmatprep.subr.bf16.mxu1 %v1598_v21 }
  0x75   :  { %1371 = vmatpush3.bf16.msra.mxu0 %v1500_v24 }
  0x76   :  { %1372 = vmatprep.subr.bf16.mxu0 %v1598_v21 }
  0x77   :  { %1391 = vmatpush3.bf16.msra.mxu1 %v1508_v32 }
  0x78   :  { %1392 = vmatprep.subr.bf16.mxu1 %v1598_v21 }
  0x79   :  { %1373 = vmatpush3.bf16.msra.mxu0 %v1501_v25 }
  0x7a   :  { %1374 = vmatprep.subr.bf16.mxu0 %v1598_v21 }
  0x7b   :  { %1393 = vmatpush3.bf16.msra.mxu1 %v1509_v33 }
  0x7c   :  { %1394 = vmatprep.subr.bf16.mxu1 %v1598_v21 }
  0x7d   :  { %1375 = vmatpush3.bf16.msra.mxu0 %v1502_v26 }
  0x7e   :  { %1376 = vmatprep.subr.bf16.mxu0 %v1598_v21 }
  0x7f   :  { %1395 = vmatpush3.bf16.msra.mxu1 %v1510_v34 }
  0x80   :  { %1396 = vmatprep.subr.bf16.mxu1 %v1598_v21 }
  0x81   :  { %1377 = vmatpush3.bf16.msra.mxu0 %v1503_v27 }
  0x82   :  { %1378 = vmatprep.subr.bf16.mxu0 %v1598_v21 }
  0x83   :  { %1397 = vmatpush3.bf16.msra.mxu1 %v1511_v62 }
  0x84   :  { %1398 = vmatprep.subr.bf16.mxu1 %v1598_v21 }
  0x85   :  { %1379 = vmatpush3.bf16.msra.mxu0 %v1504_v28 }
  0x86   :  { %1404 = vmatprep.subr.bf16.mxu0 %v1598_v21 }
  0x87   :  { %1399 = vmatpush3.bf16.msra.mxu1 %v1512_v63 }
 0x11b   :  { %v1265_v35 = vpop.f32.mrb[0].mxu0 }
 0x11c   :  { %v1266_v37 = vpop.f32.mrb[1].mxu0  ;;  %v1287_v38 = vpop.f32.mrb[0].mxu1 }
 0x11d   :  { %v1267_v39 = vadd.f32 %v1266_v37, %v1265_v35  ;;  %v1268_v40 = vpop.f32.mrb[2].mxu0  ;;  %v1288_v41 = vpop.f32.mrb[1].mxu1 }
 0x11e   :  { %v1269_v42 = vpop.f32.mrb[3].mxu0  ;;  %v1289_v44 = vadd.f32 %v1288_v41, %v1287_v38  ;;  %v1290_v45 = vpop.f32.mrb[2].mxu1 }
 0x11f   :  { %v675_v43 = vadd.f32 %v1267_v39, %v1157_v36  ;;  %v1291_v46 = vpop.f32.mrb[3].mxu1 }
 0x121   :  { %v715_v47 = vadd.f32 %v1289_v44, %v675_v43 }
 0x13b   :  { %v1309_v48 = vpop.f32.mrb[4].mxu0 }
 0x13c   :  { %v1310_v49 = vpop.f32.mrb[5].mxu0  ;;  %v1331_v50 = vpop.f32.mrb[4].mxu1 }
 0x13d   :  { %v1311_v51 = vadd.f32 %v1310_v49, %v1309_v48  ;;  %v1312_v52 = vpop.f32.mrb[6].mxu0  ;;  %v1332_v53 = vpop.f32.mrb[5].mxu1 }
 0x13e   :  { %v1313_v54 = vpop.f32.mrb[7].mxu0  ;;  %v1333_v56 = vadd.f32 %v1332_v53, %v1331_v50  ;;  %v1334_v57 = vpop.f32.mrb[6].mxu1 }
 0x13f   :  { %v755_v55 = vadd.f32 %v1311_v51, %v715_v47  ;;  %v1335_v58 = vpop.f32.mrb[7].mxu1 }
 0x141   :  { %v795_v59 = vadd.f32 %v1333_v56, %v755_v55 }
 0x143   :  { %v800_v60 = vmax.f32 %v795_v59, 0.0 }
 0x145   :  { %v801_v61 = vpack.c.bf16 %v800_v60, %v800_v60 }
 0x147   :  { %1381 = vmatmul.mubr.bf16.vlgmr.msra.gmra.mrb[8].mxu0 %v801_v61 }
 0x148   :  { %1420 = vmatprep.mubr.msk.bf16.mxu0 %vm1599_vm0, %v1598_v21  ;;  %1405 = vmatpush3.bf16.msra.mxu0 %v1513_v0 }
 0x149   :  { %1406 = vmatprep.subr.bf16.mxu0 %v1598_v21 }
 0x14c   :  { %1407 = vmatpush3.bf16.msra.mxu0 %v1514_v1 }
 0x14d   :  { %1408 = vmatprep.subr.bf16.mxu0 %v1598_v21 }
 0x150   :  { %1409 = vmatpush3.bf16.msra.mxu0 %v1515_v2 }
 0x151   :  { %1410 = vmatprep.subr.bf16.mxu0 %v1598_v21 }
 0x154   :  { %1411 = vmatpush3.bf16.msra.mxu0 %v1516_v3 }
 0x155   :  { %1412 = vmatprep.subr.bf16.mxu0 %v1598_v21 }
 0x158   :  { %1413 = vmatpush3.bf16.msra.mxu0 %v1517_v4 }
 0x159   :  { %1414 = vmatprep.subr.bf16.mxu0 %v1598_v21 }
 0x15c   :  { %1415 = vmatpush3.bf16.msra.mxu0 %v1518_v5 }
 0x15d   :  { %1416 = vmatprep.subr.bf16.mxu0 %v1598_v21 }
 0x160   :  { %1417 = vmatpush3.bf16.msra.mxu0 %v1519_v14 }
 0x161   :  { %1418 = vmatprep.subr.bf16.mxu0 %v1598_v21  ;;  %v1240_v21 = vld [vmem:[%s1801_s8] ss:$0 sm:$0xff] }
 0x164   :  { %1419 = vmatpush3.bf16.msra.mxu0 %v1520_v15 }
 0x21a   :  { %v907_v7 = vpop.f32.mrb[8].mxu0 }
 0x21b   :  { %v908_v8 = vadd.f32 %v1222_v6, %v907_v7  ;;  %v1382_v9 = vpop.f32.mrb[9].mxu0 }
 0x21c   :  { %v910_v10 = vpop.f32.mrb[10].mxu0 }
 0x21d   :  { %v913_v11 = vmax.f32 %v908_v8, 0.0  ;;  %v1383_v12 = vpop.f32.mrb[11].mxu0 }
 0x21f   :  { %v914_v13 = vpack.c.bf16 %v913_v11, %v913_v11 }
 0x221   :  { %1401 = vmatmul.mubr.bf16.vlgmr.msra.gmra.mrb[8].mxu1 %v914_v13 }
 0x2f4   :  { %v1020_v17 = vpop.f32.mrb[8].mxu1 }
 0x2f5   :  { %v1021_v18 = vadd.f32 %v1231_v16, %v1020_v17  ;;  %v1402_v19 = vpop.f32.mrb[9].mxu1 }
 0x2f6   :  { %v1023_v20 = vpop.f32.mrb[10].mxu1 }
 0x2f7   :  { %v1026_v22 = vmax.f32 %v1021_v18, 0.0  ;;  %v1403_v23 = vpop.f32.mrb[11].mxu1 }
 0x2f9   :  { %v1027_v24 = vpack.c.bf16 %v1026_v22, %v1026_v22 }
 0x2fb   :  { %1421 = vmatmul.mubr.bf16.vlgmr.msra.gmra.mrb[12].mxu0 %v1027_v24 }
 0x3ce   :  { %v1133_v25 = vpop.f32.mrb[12].mxu0 }
 0x3cf   :  { %v1134_v26 = vadd.f32 %v1240_v21, %v1133_v25  ;;  %v1422_v27 = vpop.f32.mrb[13].mxu0 }
 0x3d0   :  { %v1136_v28 = vpop.f32.mrb[14].mxu0 }
 0x3d1   :  { %v1423_v29 = vpop.f32.mrb[15].mxu0  ;;  %1140 = vst.msk [vmem:[#allocation7] sm:$0x3] %vm1139_vm1, %v1134_v26 }
 0x3d2   :  { %1576 = shalt.err (!%p1573_p6)
}
 0x3d3   :  { %s1577_s8 = scalar_lea.hbm %s1802_s9, 32 }
 0x3d4   :  { %p1578_p7 = scmp.ne.s32.totalorder %s1802_s9, %s1577_s8  ;;  %p1581_p8 = scmp.lt.u32.totalorder %s1577_s8, %s1802_s9 }
 0x3d6   :  { %p1583_p9 = pnand %p1581_p8, %p1578_p7 }
 0x3d8   :  { %1586 = shalt.err (!%p1583_p9)
}
 0x3d9   :  { %1150 = dma.vmem_to_hbm [thread:$0]  %s1148_s27, 32, %s1802_s9, [#allocation4]  }
 0x3da   :  { %1591 = dma.done.wait [#allocation4], 32  }
 0x3db   :  { %1592 = vsyncadd [#allocation4], 4294967264 }
 0x3dc   :  { %1154 = vsyncpa [#allocation3], 1 }
 0x3dd   :  { %1155 = vsyncpa [#allocation6], 1 }
 0x3de   :  { %1156 = vsyncpa [#allocation4], 1 }

</bundles_post_ra>
